<compile_context>
chip_gen: v7x
topology: tpu7x:2x2x1
jax: 0.10.0
libtpu: 0.0.40
codegen_flags: <defaults>
</compile_context>

<pallas_src>
import functools

import jax
import jax.numpy as jnp
from jax.experimental import pallas as pl
from jax.experimental.pallas import tpu as pltpu


# -----------------------------------------------------------------------------
# Kernel body (shared by both layouts):
#   x_ref : (TB, d_in)           batch tile (original dtype; cast in VMEM)
#   wa_ref: (d_in, K1)           first-matmul weight block
#   wb_ref: (K1',  N )           second-matmul weight block
#   o_ref : (TB, N)              output tile
# -----------------------------------------------------------------------------
def _expert_fused_kernel(x_ref, wa_ref, wb_ref, o_ref, *, apply_relu):
    x = x_ref[...].astype(wa_ref.dtype)            # in-VMEM cast, no HBM pass
    h = jnp.dot(x, wa_ref[...], preferred_element_type=jnp.float32)
    if apply_relu:
        h = jnp.maximum(h, 0.0)                    # f32 VPU max (v5e-safe)
    out = jnp.dot(h.astype(wb_ref.dtype), wb_ref[...],
                  preferred_element_type=jnp.float32)
    o_ref[...] = out.astype(o_ref.dtype)


# -----------------------------------------------------------------------------
# One-time parameter repack (hoisted out of the hot forward path).
# For multiple tasks, concatenate the lists first (w_a cat on dim=1, w_b on
# dim=0) exactly like the PyTorch forward; the math below is identical with P
# standing for the concatenated prompt length.
# -----------------------------------------------------------------------------
def prepare_expert_params(w_a, w_b, compute_dtype=jnp.float32, block_diag_max_p=8):
    d_in, P, M = w_a.shape
    d_out = w_b.shape[-1]
    if P <= block_diag_max_p:
        # Small P: lane-dense fused layout.  bd[p*M+m, q*d_out+o] = (p==q) * w_b[p,m,o]
        w_a_flat = w_a.reshape(d_in, P * M).astype(compute_dtype)
        eye = jnp.eye(P, dtype=w_b.dtype)
        w_b_bd = (eye[:, None, :, None] * w_b[:, :, None, :]).reshape(
            P * M, P * d_out).astype(compute_dtype)
        return dict(layout="block_diag", w_a=w_a_flat, w_b=w_b_bd,
                    P=P, M=M, d_in=d_in, d_out=d_out)
    # Larger P: keep per-prompt weights (no P-times FLOP / VMEM inflation).
    return dict(layout="per_prompt",
                w_a=jnp.transpose(w_a, (1, 0, 2)).astype(compute_dtype),  # (P, d_in, M)
                w_b=w_b.astype(compute_dtype),                            # (P, M, d_out)
                P=P, M=M, d_in=d_in, d_out=d_out)


# -----------------------------------------------------------------------------
# Tiling / VMEM budgeting helpers
# -----------------------------------------------------------------------------
_MIN_SPLIT_B = 128                    # only split the batch once it's big enough
_VMEM_BUDGET = 48 * 1024 * 1024       # stay comfortably under v7x's 64 MiB


def _round_up(x, m):
    return (x + m - 1) // m * m


def _pick_tile_b(batch, sub, tile_b_max):
    if batch < _MIN_SPLIT_B:
        return min(batch, tile_b_max)                     # single (or few) tiles
    # >= 2 grid steps so dimension_semantics=("parallel",) can shard across
    # v7x's two TensorCores; no-op overhead on single-TC v5e/v6e.
    tb = _round_up(pl.cdiv(batch, 2), sub)
    return max(sub, min(tb, tile_b_max))


def _shrink_for_vmem(tb, vmem_fn, sub, budget):
    while tb > sub and vmem_fn(tb) > budget:
        tb = max(sub, _round_up(tb // 2, sub))
    return tb


# -----------------------------------------------------------------------------
# pallas_call wrappers
# -----------------------------------------------------------------------------
def _run_block_diag(x, w_a_flat, w_b_bd, *, apply_relu, out_dtype, tb,
                    single_buffer_weights, vmem_limit_bytes):
    B, d_in = x.shape
    pm = w_a_flat.shape[1]
    pn = w_b_bd.shape[1]

    # Resident weights: constant index_map => a second pipeline buffer is waste.
    w_kwargs = dict(pipeline_mode=pl.Buffered(1)) if single_buffer_weights else {}

    kernel = functools.partial(_expert_fused_kernel, apply_relu=apply_relu)
    return pl.pallas_call(
        kernel,
        out_shape=jax.ShapeDtypeStruct((B, pn), out_dtype),
        grid_spec=pltpu.PrefetchScalarGridSpec(
            num_scalar_prefetch=0,
            grid=(pl.cdiv(B, tb),),
            in_specs=[
                pl.BlockSpec((tb, d_in), lambda i: (i, 0)),               # x tile
                pl.BlockSpec((d_in, pm), lambda i: (0, 0), **w_kwargs),   # w_a (resident)
                pl.BlockSpec((pm, pn), lambda i: (0, 0), **w_kwargs),     # block-diag w_b
            ],
            out_specs=pl.BlockSpec((tb, pn), lambda i: (i, 0)),
        ),
        compiler_params=pltpu.CompilerParams(
            dimension_semantics=("parallel",),
            vmem_limit_bytes=vmem_limit_bytes,
        ),
        cost_estimate=pl.CostEstimate(
            # Counts the P-times-redundant block-diag FLOPs: accurate for what
            # the kernel executes (not "useful" work for roofline analysis).
            flops=2 * B * (d_in * pm + pm * pn),
            transcendentals=0,
            bytes_accessed=(x.size * x.dtype.itemsize
                            + w_a_flat.size * w_a_flat.dtype.itemsize
                            + w_b_bd.size * w_b_bd.dtype.itemsize
                            + B * pn * jnp.dtype(out_dtype).itemsize),
        ),
    )(x, w_a_flat, w_b_bd)


def _run_per_prompt(x, w_a_t, w_b, *, apply_relu, out_dtype, tb, vmem_limit_bytes):
    B, d_in = x.shape
    P, _, M = w_a_t.shape
    d_out = w_b.shape[-1]
    grid = (pl.cdiv(B, tb), P)

    kernel = functools.partial(_expert_fused_kernel, apply_relu=apply_relu)
    common = dict(
        compiler_params=pltpu.CompilerParams(
            # Batch axis parallel (v7x 2-TC sharding); prompt axis sequential so
            # the x tile stays resident across the p sweep (index unchanged).
            dimension_semantics=("parallel", "arbitrary"),
            vmem_limit_bytes=vmem_limit_bytes,
        ),
        cost_estimate=pl.CostEstimate(
            flops=2 * B * P * (d_in * M + M * d_out),
            transcendentals=0,
            bytes_accessed=(x.size * x.dtype.itemsize
                            + w_a_t.size * w_a_t.dtype.itemsize
                            + w_b.size * w_b.dtype.itemsize
                            + B * P * d_out * jnp.dtype(out_dtype).itemsize),
        ),
    )
    in_specs = [
        pl.BlockSpec((tb, d_in), lambda i, p: (i, 0)),          # x tile (revisited over p)
        pl.BlockSpec((None, d_in, M), lambda i, p: (p, 0, 0)),  # w_a[p]
        pl.BlockSpec((None, M, d_out), lambda i, p: (p, 0, 0)), # w_b[p]
    ]

    if d_out % 128 == 0:
        # Lane-dense (B, P*d_out) output — unmasked vst, free reshape outside.
        out = pl.pallas_call(
            kernel,
            out_shape=jax.ShapeDtypeStruct((B, P * d_out), out_dtype),
            grid_spec=pltpu.PrefetchScalarGridSpec(
                num_scalar_prefetch=0, grid=grid, in_specs=in_specs,
                out_specs=pl.BlockSpec((tb, d_out), lambda i, p: (i, p)),
            ),
            **common,
        )(x, w_a_t, w_b)
        return out.reshape(B, P, d_out)

    # d_out is not a 128-lane multiple: keep full-width lane blocks by writing
    # (P, B, d_out) and transposing once outside the kernel.
    out = pl.pallas_call(
        kernel,
        out_shape=jax.ShapeDtypeStruct((P, B, d_out), out_dtype),
        grid_spec=pltpu.PrefetchScalarGridSpec(
            num_scalar_prefetch=0, grid=grid, in_specs=in_specs,
            out_specs=pl.BlockSpec((None, tb, d_out), lambda i, p: (p, i, 0)),
        ),
        **common,
    )(x, w_a_t, w_b)
    return jnp.transpose(out, (1, 0, 2))


# -----------------------------------------------------------------------------
# Public forward
# -----------------------------------------------------------------------------
def expert_net_forward(x, params, *, mode="MLP_expert", out_dtype=jnp.float32,
                       tile_b_max=256, vmem_budget_bytes=_VMEM_BUDGET):
    """Fused Pallas forward. Returns (B, P, d_out) in `out_dtype`."""
    B, d_in = x.shape
    P, M, d_out = params["P"], params["M"], params["d_out"]
    apply_relu = "MLP_expert" in mode

    compute_dtype = params["w_a"].dtype
    x_it = x.dtype.itemsize
    w_it = jnp.dtype(compute_dtype).itemsize
    o_it = jnp.dtype(out_dtype).itemsize
    sub = 16 if (compute_dtype == jnp.bfloat16 or out_dtype == jnp.bfloat16) else 8

    tb = _pick_tile_b(B, sub, tile_b_max)

    if params["layout"] == "block_diag":
        pm, pn = P * M, P * d_out

        def vmem_fn(t):
            # x tile + out tile double-buffered; weights counted x2 conservatively
            # (covers the fallback where Buffered(1) is unavailable).
            return (2 * t * d_in * x_it
                    + 2 * t * pn * o_it
                    + 2 * (d_in * pm + pm * pn) * w_it)

        tb = _shrink_for_vmem(tb, vmem_fn, sub, vmem_budget_bytes)
        vmem_limit = int(min(max(32 * 2**20, vmem_fn(tb) + 8 * 2**20), 128 * 2**20))

        run = functools.partial(_run_block_diag, x, params["w_a"], params["w_b"],
                                apply_relu=apply_relu, out_dtype=out_dtype, tb=tb,
                                vmem_limit_bytes=vmem_limit)
        try:
            out_flat = run(single_buffer_weights=True)
        except Exception:
            # Fallback for jax versions that reject pl.Buffered(1) on a BlockSpec.
            out_flat = run(single_buffer_weights=False)
        return out_flat.reshape(B, P, d_out)

    # ---- per-prompt layout (large P) ----
    def vmem_fn(t):
        return (2 * t * d_in * x_it
                + 2 * t * d_out * o_it
                + 2 * (d_in * M + M * d_out) * w_it)

    tb = _shrink_for_vmem(tb, vmem_fn, sub, vmem_budget_bytes)
    vmem_limit = int(min(max(32 * 2**20, vmem_fn(tb) + 8 * 2**20), 128 * 2**20))
    return _run_per_prompt(x, params["w_a"], params["w_b"],
                           apply_relu=apply_relu, out_dtype=out_dtype, tb=tb,
                           vmem_limit_bytes=vmem_limit)


def expert_net_reference(x, w_a, w_b, mode="MLP_expert"):
    """Pure-JAX reference mirroring the PyTorch code line-by-line."""
    d_in = w_a.shape[0]
    x_mid = x @ w_a.reshape(d_in, -1)
    if "MLP_expert" in mode:
        x_mid = jnp.maximum(x_mid, 0.0)
    x_mid = x_mid.reshape(x_mid.shape[0], w_b.shape[0], -1)
    out = jnp.einsum("pbm,pmo->pbo", jnp.transpose(x_mid, (1, 0, 2)), w_b)
    return jnp.transpose(out, (1, 0, 2))


if __name__ == "__main__":
    # Small shapes consistent with the module's __init__.
    mode = "MLP_expert"
    batch = 8
    input_dim = 32
    output_dim = 32
    prompt_length = 4
    mid_dim = 16

    key = jax.random.PRNGKey(0)
    kx, ka, kb = jax.random.split(key, 3)

    # Deterministic synthetic parameters (torch.FloatTensor(...) is uninitialized;
    # any deterministic init preserves the forward semantics).
    x = jax.random.normal(kx, (batch, input_dim), dtype=jnp.float32)
    w_a = jax.random.normal(ka, (input_dim, prompt_length, mid_dim), dtype=jnp.float32) * 0.02
    w_b = jax.random.normal(kb, (prompt_length, mid_dim, output_dim), dtype=jnp.float32) * 0.02

    ref = jax.block_until_ready(expert_net_reference(x, w_a, w_b, mode))

    # 1) block-diagonal fused path (small P), f32 compute — exact semantics
    p_f32 = prepare_expert_params(w_a, w_b, compute_dtype=jnp.float32)
    out_f32 = jax.block_until_ready(expert_net_forward(x, p_f32, mode=mode))
    assert out_f32.shape == (batch, prompt_length, output_dim), out_f32.shape
    assert jnp.allclose(out_f32, ref, atol=1e-5, rtol=1e-5), \
        float(jnp.max(jnp.abs(out_f32 - ref)))

    # 2) block-diag path with bf16 weights (f32 MXU accumulation) — loose tolerance
    p_bf16 = prepare_expert_params(w_a, w_b, compute_dtype=jnp.bfloat16)
    out_bf16 = jax.block_until_ready(expert_net_forward(x, p_bf16, mode=mode))
    assert jnp.allclose(out_bf16, ref, atol=1e-2, rtol=5e-2), \
        float(jnp.max(jnp.abs(out_bf16 - ref)))

    # 3) per-prompt path (the large-P fallback), f32 — exact semantics
    p_pp = prepare_expert_params(w_a, w_b, compute_dtype=jnp.float32, block_diag_max_p=0)
    out_pp = jax.block_until_ready(expert_net_forward(x, p_pp, mode=mode))
    assert out_pp.shape == (batch, prompt_length, output_dim), out_pp.shape
    assert jnp.allclose(out_pp, ref, atol=1e-5, rtol=1e-5), \
        float(jnp.max(jnp.abs(out_pp - ref)))

    # 4) bf16 output writeback option (f32 compute + accumulation inside)
    out_bf16_store = jax.block_until_ready(
        expert_net_forward(x, p_f32, mode=mode, out_dtype=jnp.bfloat16))
    assert out_bf16_store.dtype == jnp.bfloat16
    assert jnp.allclose(out_bf16_store.astype(jnp.float32), ref, atol=5e-3, rtol=5e-2), \
        float(jnp.max(jnp.abs(out_bf16_store.astype(jnp.float32) - ref)))

    print("KERNEL_OK")
</pallas_src>

<mosaic_0001>
module attributes {stable_mosaic.version = 11 : i64} {
  func.func @_expert_fused_kernel(%arg0: i32, %arg1: memref<8x32xf32, #tpu.memory_space<vmem>>, %arg2: memref<32x64xf32, #tpu.memory_space<vmem>>, %arg3: memref<64x128xf32, #tpu.memory_space<vmem>>, %arg4: memref<8x128xf32, #tpu.memory_space<vmem>>) attributes {dimension_semantics = [#tpu.dimension_semantics<parallel>], iteration_bounds = array<i64: 1>, scalar_prefetch = 0 : i64, scratch_operands = 0 : i64, tpu.core_type = #tpu.core_type<tc>, window_params = [{transform_indices = @transform_0, window_bounds = array<i64: 8, 32>}, {pipeline_mode = #tpu.pipeline_mode<synchronous>, transform_indices = @transform_1, window_bounds = array<i64: 32, 64>}, {pipeline_mode = #tpu.pipeline_mode<synchronous>, transform_indices = @transform_2, window_bounds = array<i64: 64, 128>}, {transform_indices = @transform_3, window_bounds = array<i64: 8, 128>}]} {
    %c0 = arith.constant 0 : index
    %c0_0 = arith.constant 0 : index
    %0 = vector.load %arg1[%c0, %c0_0] : memref<8x32xf32, #tpu.memory_space<vmem>>, vector<8x32xf32>
    %c0_1 = arith.constant 0 : index
    %c0_2 = arith.constant 0 : index
    %1 = vector.load %arg2[%c0_1, %c0_2] : memref<32x64xf32, #tpu.memory_space<vmem>>, vector<32x64xf32>
    %cst = arith.constant dense<0.000000e+00> : vector<8x64xf32>
    %2 = tpu.matmul %0, %1, %cst {dimension_numbers = #tpu.dot_dimension_numbers<[1], [0], [0], [1], [0, 0, 1, 1], [], []>} : vector<8x32xf32>, vector<32x64xf32>, vector<8x64xf32> -> vector<8x64xf32>
    %cst_3 = arith.constant 0.000000e+00 : f32
    %3 = vector.broadcast %cst_3 : f32 to vector<8x64xf32>
    %4 = arith.maximumf %2, %3 : vector<8x64xf32>
    %c0_4 = arith.constant 0 : index
    %c0_5 = arith.constant 0 : index
    %5 = vector.load %arg3[%c0_4, %c0_5] : memref<64x128xf32, #tpu.memory_space<vmem>>, vector<64x128xf32>
    %cst_6 = arith.constant dense<0.000000e+00> : vector<8x128xf32>
    %6 = tpu.matmul %4, %5, %cst_6 {dimension_numbers = #tpu.dot_dimension_numbers<[1], [0], [0], [1], [0, 0, 1, 1], [], []>} : vector<8x64xf32>, vector<64x128xf32>, vector<8x128xf32> -> vector<8x128xf32>
    %c0_7 = arith.constant 0 : index
    %c0_8 = arith.constant 0 : index
    %7 = vector.load %arg4[%c0_7, %c0_8] : memref<8x128xf32, #tpu.memory_space<vmem>>, vector<8x128xf32>
    tpu.vector_store %arg4[%c0_7, %c0_8], %6 {strides = array<i32>} : memref<8x128xf32, #tpu.memory_space<vmem>>, vector<8x128xf32>,
    return
  }
  func.func @transform_0(%arg0: i32) -> (i32, i32) {
    %c0_i32 = arith.constant 0 : i32
    %c0_i32_0 = arith.constant 0 : i32
    return %arg0, %c0_i32 : i32, i32
  }
  func.func @transform_1(%arg0: i32) -> (i32, i32) {
    %c0_i32 = arith.constant 0 : i32
    %c0_i32_0 = arith.constant 0 : i32
    %c0_i32_1 = arith.constant 0 : i32
    return %c0_i32, %c0_i32_0 : i32, i32
  }
  func.func @transform_2(%arg0: i32) -> (i32, i32) {
    %c0_i32 = arith.constant 0 : i32
    %c0_i32_0 = arith.constant 0 : i32
    %c0_i32_1 = arith.constant 0 : i32
    return %c0_i32, %c0_i32_0 : i32, i32
  }
  func.func @transform_3(%arg0: i32) -> (i32, i32) {
    %c0_i32 = arith.constant 0 : i32
    %c0_i32_0 = arith.constant 0 : i32
    return %arg0, %c0_i32 : i32, i32
  }
}

module attributes {stable_mosaic.version = 11 : i64} {
  func.func @_expert_fused_kernel(%arg0: i32, %arg1: memref<8x32xf32, #tpu.memory_space<vmem>>, %arg2: memref<32x64xf32, #tpu.memory_space<vmem>>, %arg3: memref<64x128xf32, #tpu.memory_space<vmem>>, %arg4: memref<8x128xf32, #tpu.memory_space<vmem>>) attributes {dimension_semantics = [#tpu.dimension_semantics<parallel>], iteration_bounds = array<i64: 1>, scalar_prefetch = 0 : i64, scratch_operands = 0 : i64, tpu.core_type = #tpu.core_type<tc>, window_params = [{transform_indices = @transform_0, window_bounds = array<i64: 8, 32>}, {pipeline_mode = #tpu.pipeline_mode<synchronous>, transform_indices = @transform_1, window_bounds = array<i64: 32, 64>}, {pipeline_mode = #tpu.pipeline_mode<synchronous>, transform_indices = @transform_2, window_bounds = array<i64: 64, 128>}, {transform_indices = @transform_3, window_bounds = array<i64: 8, 128>}]} {
    %c0 = arith.constant 0 : index
    %c0_0 = arith.constant 0 : index
    %0 = vector.load %arg1[%c0, %c0_0] : memref<8x32xf32, #tpu.memory_space<vmem>>, vector<8x32xf32>
    %c0_1 = arith.constant 0 : index
    %c0_2 = arith.constant 0 : index
    %1 = vector.load %arg2[%c0_1, %c0_2] : memref<32x64xf32, #tpu.memory_space<vmem>>, vector<32x64xf32>
    %cst = arith.constant dense<0.000000e+00> : vector<8x64xf32>
    %2 = tpu.matmul %0, %1, %cst {dimension_numbers = #tpu.dot_dimension_numbers<[1], [0], [0], [1], [0, 0, 1, 1], [], []>} : vector<8x32xf32>, vector<32x64xf32>, vector<8x64xf32> -> vector<8x64xf32>
    %cst_3 = arith.constant 0.000000e+00 : f32
    %3 = vector.broadcast %cst_3 : f32 to vector<8x64xf32>
    %4 = arith.maximumf %2, %3 : vector<8x64xf32>
    %c0_4 = arith.constant 0 : index
    %c0_5 = arith.constant 0 : index
    %5 = vector.load %arg3[%c0_4, %c0_5] : memref<64x128xf32, #tpu.memory_space<vmem>>, vector<64x128xf32>
    %cst_6 = arith.constant dense<0.000000e+00> : vector<8x128xf32>
    %6 = tpu.matmul %4, %5, %cst_6 {dimension_numbers = #tpu.dot_dimension_numbers<[1], [0], [0], [1], [0, 0, 1, 1], [], []>} : vector<8x64xf32>, vector<64x128xf32>, vector<8x128xf32> -> vector<8x128xf32>
    %c0_7 = arith.constant 0 : index
    %c0_8 = arith.constant 0 : index
    %7 = vector.load %arg4[%c0_7, %c0_8] : memref<8x128xf32, #tpu.memory_space<vmem>>, vector<8x128xf32>
    tpu.vector_store %arg4[%c0_7, %c0_8], %6 {strides = array<i32>} : memref<8x128xf32, #tpu.memory_space<vmem>>, vector<8x128xf32>,
    return
  }
  func.func @transform_0(%arg0: i32) -> (i32, i32) {
    %c0_i32 = arith.constant 0 : i32
    %c0_i32_0 = arith.constant 0 : i32
    return %arg0, %c0_i32 : i32, i32
  }
  func.func @transform_1(%arg0: i32) -> (i32, i32) {
    %c0_i32 = arith.constant 0 : i32
    %c0_i32_0 = arith.constant 0 : i32
    %c0_i32_1 = arith.constant 0 : i32
    return %c0_i32, %c0_i32_0 : i32, i32
  }
  func.func @transform_2(%arg0: i32) -> (i32, i32) {
    %c0_i32 = arith.constant 0 : i32
    %c0_i32_0 = arith.constant 0 : i32
    %c0_i32_1 = arith.constant 0 : i32
    return %c0_i32, %c0_i32_0 : i32, i32
  }
  func.func @transform_3(%arg0: i32) -> (i32, i32) {
    %c0_i32 = arith.constant 0 : i32
    %c0_i32_0 = arith.constant 0 : i32
    return %arg0, %c0_i32 : i32, i32
  }
}

</mosaic_0001>

<bundles_post_ra>
// kernel: tpu_custom_call.1
= control target key start
LH: loop header
LB: loop body
LE: loop exit
PB: predicated region body
PF: predicated region fallthrough
CT: control target
= control target key end

     0   :  { %8 = vsyncpa [#allocation3], 0  ;;  %s483_s0 = inlined_call_operand.hbm [shape: f32[8,32], index: 0, kind: input, shape index: {}]   ;;  %s484_s1 = inlined_call_operand.hbm [shape: f32[32,64], index: 1, kind: input, shape index: {}]   ;;  %s485_s2 = inlined_call_operand.hbm [shape: f32[64,128], index: 2, kind: input, shape index: {}]   ;;  %s486_s3 = inlined_call_operand.hbm [shape: f32[8,128], index: 3, kind: output, shape index: {}]  }
   0x1   :  { %9 = vsyncpa [#allocation6], 0 }
   0x2   :  { %10 = vsyncpa [#allocation4], 0  ;;  %s400_s12 = smov [#allocation5]   ;;  %s306_s16 = scalar_lea.hbm %s484_s1, 512 }
   0x3   :  { %s26_s13 = sshll.u32 %s400_s12, 4  ;;  %p307_p0 = scmp.ne.s32.totalorder %s484_s1, %s306_s16  ;;  %s27_s13 = int_to_ptr.vmem [resolvable:$true] %s26_s13 }
   0x4   :  { %p310_p1 = scmp.lt.u32.totalorder %s306_s16, %s484_s1 }
   0x6   :  { %p312_p2 = pnand %p310_p1, %p307_p0 }
   0x8   :  { %315 = shalt.err (!%p312_p2)
}
   0x9   :  { %s316_s21 = scalar_lea.vmem %s27_s13, 512  ;;  %p321_p4 = scmp.lt.s32.totalorder %s27_s13, %s27_s13 }
   0xa   :  { %p317_p3 = scmp.ne.s32.totalorder %s27_s13, %s316_s21  ;;  %p322_p5 = scmp.lt.s32.totalorder %s316_s21, %s316_s21 }
   0xc   :  { %p323_p6 = por %p322_p5, %p321_p4 }
   0xe   :  { %p324_p7 = pnand %p323_p6, %p317_p3 }
  0x10   :  { %327 = shalt.err (!%p324_p7)
}
  0x11   :  { %s401_s22 = smov 128   ;;  %s402_s23 = smov 8  }
  0x12   :  { %32 = dma.hbm_to_vmem [thread:$0]  %s484_s1, 512, %s27_s13, [#allocation6], %s401_s22, %s401_s22, %s402_s23  }
  0x13   :  { %s403_s26 = smov [#allocation2]   ;;  %s404_s28 = smov [#allocation7]  }
  0x14   :  { %s17_s27 = sshll.u32 %s403_s26, 4  ;;  %s38_s29 = sshll.u32 %s404_s28, 4  ;;  %s18_s27 = int_to_ptr.vmem [resolvable:$true] %s17_s27  ;;  %s39_s29 = int_to_ptr.vmem [resolvable:$true] %s38_s29 }
  0x15   :  { %s328_s5 = scalar_lea.hbm %s483_s0, 128 }
  0x16   :  { %p329_p8 = scmp.ne.s32.totalorder %s483_s0, %s328_s5  ;;  %p332_p9 = scmp.lt.u32.totalorder %s328_s5, %s483_s0 }
  0x18   :  { %p334_p10 = pnand %p332_p9, %p329_p8 }
  0x1a   :  { %337 = shalt.err (!%p334_p10)
}
  0x1b   :  { %s338_s1 = scalar_lea.vmem %s18_s27, 128  ;;  %p343_p12 = scmp.lt.s32.totalorder %s18_s27, %s18_s27 }
  0x1c   :  { %p339_p11 = scmp.ne.s32.totalorder %s18_s27, %s338_s1  ;;  %p344_p13 = scmp.lt.s32.totalorder %s338_s1, %s338_s1 }
  0x1e   :  { %p345_p0 = por %p344_p13, %p343_p12 }
  0x20   :  { %p346_p1 = pnand %p345_p0, %p339_p11 }
  0x22   :  { %349 = shalt.err (!%p346_p1)
}
  0x23   :  { %20 = dma.hbm_to_vmem [thread:$0]  %s483_s0, 128, %s18_s27, [#allocation3]  }
  0x24   :  { %s350_s14 = scalar_lea.hbm %s485_s2, 1024 }
  0x25   :  { %p351_p2 = scmp.ne.s32.totalorder %s485_s2, %s350_s14  ;;  %p354_p3 = scmp.lt.u32.totalorder %s350_s14, %s485_s2 }
  0x27   :  { %p356_p4 = pnand %p354_p3, %p351_p2 }
  0x29   :  { %359 = shalt.err (!%p356_p4)
}
  0x2a   :  { %s360_s19 = scalar_lea.vmem %s39_s29, 1024  ;;  %p365_p6 = scmp.lt.s32.totalorder %s39_s29, %s39_s29 }
  0x2b   :  { %p361_p5 = scmp.ne.s32.totalorder %s39_s29, %s360_s19  ;;  %p366_p7 = scmp.lt.s32.totalorder %s360_s19, %s360_s19 }
  0x2d   :  { %p367_p8 = por %p366_p7, %p365_p6 }
  0x2f   :  { %p368_p9 = pnand %p367_p8, %p361_p5 }
  0x31   :  { %371 = shalt.err (!%p368_p9)
}
  0x32   :  { %44 = dma.hbm_to_vmem [thread:$0]  %s485_s2, 1024, %s39_s29, [#allocation6], %s401_s22, %s401_s22, %s402_s23  }
  0x33   :  { %394 = dma.done.wait [#allocation3], 128  }
  0x34   :  { %395 = vsyncadd [#allocation3], 4294967168 }
  0x35   :  { %396 = dma.done.wait [#allocation6], 1536  }
  0x36   :  { %397 = vsyncadd [#allocation6], 4294965760  ;;  %v405_v0 = vmov 0.0|0.0   ;;  %vm406_vm0 = vmmov 0   ;;  %v407_v1 = vmov 0.0   ;;  %v55_v2 = vld [vmem:[#allocation5] sm:$0xff] }
  0x37   :  { %279 = vmatprep.subr.bf16.mxu0 %v405_v0  ;;  %257 = vmatprep.mubr.msk.f32.mxu0 %vm406_vm0, %v407_v1  ;;  %v56_v3 = vld [vmem:[#allocation5 + $0x8] sm:$0xff]  ;;  %v57_v4 = vld [vmem:[#allocation5 + $0x10] sm:$0xff]  ;;  %v58_v6 = vld [vmem:[#allocation5 + $0x18] sm:$0xff]  ;;  %vm59_vm1 = vcmask 261120   ;;  %vm142_vm2 = vcmask 523264   ;;  %s408_s2 = smov [#allocation8]  }
  0x38   :  { %285 = vmatprep.subr.bf16.mxu1 %v405_v0  ;;  %276 = vmatprep.mubr.msk.f32.mxu1 %vm406_vm0, %v407_v1  ;;  %v280_v5 = vpack.c.bf16 %v56_v3, %v55_v2  ;;  %v134_v7 = vld [vmem:[#allocation7] sm:$0xff]  ;;  %v135_v8 = vld [vmem:[#allocation7 + $0x8] sm:$0xff]  ;;  %v136_v9 = vld [vmem:[#allocation7 + $0x10] sm:$0xff]  ;;  %v283_v11 = vpack.c.bf16 %v58_v6, %v57_v4  ;;  %s223_s21 = sshll.u32 %s408_s2, 4  ;;  %s224_s21 = int_to_ptr.vmem [resolvable:$true] %s223_s21 }
  0x39   :  { %v137_v10 = vld [vmem:[#allocation7 + $0x18] sm:$0xff]  ;;  %v286_v12 = vpack.c.bf16 %v135_v8, %v134_v7  ;;  %v138_v14 = vld [vmem:[#allocation7 + $0x20] sm:$0xff]  ;;  %v139_v15 = vld [vmem:[#allocation7 + $0x28] sm:$0xff]  ;;  %s372_s22 = scalar_lea.vmem %s224_s21, 128  ;;  %p377_p11 = scmp.lt.s32.totalorder %s224_s21, %s224_s21 }
  0x3a   :  { %281 = vmatpush3.bf16.msra.mxu0 %v280_v5  ;;  %v289_v13 = vpack.c.bf16 %v137_v10, %v136_v9  ;;  %v54_v16 = vld [vmem:[#allocation2] sm:$0xff]  ;;  %v292_v17 = vpack.c.bf16 %v139_v15, %v138_v14  ;;  %v140_v18 = vld [vmem:[#allocation7 + $0x30] sm:$0xff]  ;;  %p373_p10 = scmp.ne.s32.totalorder %s224_s21, %s372_s22  ;;  %p378_p12 = scmp.lt.s32.totalorder %s372_s22, %s372_s22 }
  0x3b   :  { %282 = vmatprep.subr.bf16.mxu0 %v405_v0  ;;  %287 = vmatpush3.bf16.msra.mxu1 %v286_v12  ;;  %v141_v19 = vld [vmem:[#allocation7 + $0x38] sm:$0xff] }
  0x3c   :  { %288 = vmatprep.subr.bf16.mxu1 %v405_v0  ;;  %v295_v20 = vpack.c.bf16 %v141_v19, %v140_v18  ;;  %p379_p13 = por %p378_p12, %p377_p11 }
  0x3e   :  { %284 = vmatpush3.bf16.msra.mxu0 %v283_v11  ;;  %p380_p0 = pnand %p379_p13, %p373_p10 }
  0x3f   :  { %290 = vmatpush3.bf16.msra.mxu1 %v289_v13 }
  0x40   :  { %291 = vmatprep.subr.bf16.mxu1 %v405_v0 }
  0x41   :  { %258 = vmatmul.mubr.msk.f32.vlgmr.msra.gmra.mrb[0].mxu0 %vm59_vm1, %v54_v16 }
  0x43   :  { %293 = vmatpush3.bf16.msra.mxu1 %v292_v17 }
  0x44   :  { %294 = vmatprep.subr.bf16.mxu1 %v405_v0 }
  0x47   :  { %296 = vmatpush3.bf16.msra.mxu1 %v295_v20 }
 0x114   :  { %v129_v21 = vpop.f32.mrb[0].mxu0 }
 0x115   :  { %v133_v22 = vmax.f32 %v129_v21, 0.0  ;;  %v259_v23 = vpop.f32.mrb[1].mxu0 }
 0x117   :  { %277 = vmatmul.mubr.msk.f32.vlgmr.msra.gmra.mrb[0].mxu1 %vm142_vm2, %v133_v22 }
 0x1ea   :  { %v212_v24 = vpop.f32.mrb[0].mxu1 }
 0x1eb   :  { %216 = vst [vmem:[#allocation8] sm:$0xff] %v212_v24  ;;  %v278_v25 = vpop.f32.mrb[1].mxu1 }
 0x1ec   :  { %383 = shalt.err (!%p380_p0)
}
 0x1ed   :  { %s384_s25 = scalar_lea.hbm %s486_s3, 128 }
 0x1ee   :  { %p385_p1 = scmp.ne.s32.totalorder %s486_s3, %s384_s25  ;;  %p388_p2 = scmp.lt.u32.totalorder %s384_s25, %s486_s3 }
 0x1f0   :  { %p390_p3 = pnand %p388_p2, %p385_p1 }
 0x1f2   :  { %393 = shalt.err (!%p390_p3)
}
 0x1f3   :  { %226 = dma.vmem_to_hbm [thread:$0]  %s224_s21, 128, %s486_s3, [#allocation4]  }
 0x1f4   :  { %398 = dma.done.wait [#allocation4], 128  }
 0x1f5   :  { %399 = vsyncadd [#allocation4], 4294967168 }
 0x1f6   :  { %230 = vsyncpa [#allocation3], 1 }
 0x1f7   :  { %231 = vsyncpa [#allocation6], 1 }
 0x1f8   :  { %232 = vsyncpa [#allocation4], 1 }

// kernel: tpu_custom_call.1
= control target key start
LH: loop header
LB: loop body
LE: loop exit
PB: predicated region body
PF: predicated region fallthrough
CT: control target
= control target key end

     0   :  { %8 = vsyncpa [#allocation3], 0  ;;  %s483_s0 = inlined_call_operand.hbm [shape: f32[8,32], index: 0, kind: input, shape index: {}]   ;;  %s484_s1 = inlined_call_operand.hbm [shape: f32[32,64], index: 1, kind: input, shape index: {}]   ;;  %s485_s2 = inlined_call_operand.hbm [shape: f32[64,128], index: 2, kind: input, shape index: {}]   ;;  %s486_s3 = inlined_call_operand.hbm [shape: f32[8,128], index: 3, kind: output, shape index: {}]  }
   0x1   :  { %9 = vsyncpa [#allocation6], 0 }
   0x2   :  { %10 = vsyncpa [#allocation4], 0  ;;  %s400_s12 = smov [#allocation5]   ;;  %s306_s16 = scalar_lea.hbm %s484_s1, 512 }
   0x3   :  { %s26_s13 = sshll.u32 %s400_s12, 4  ;;  %p307_p0 = scmp.ne.s32.totalorder %s484_s1, %s306_s16  ;;  %s27_s13 = int_to_ptr.vmem [resolvable:$true] %s26_s13 }
   0x4   :  { %p310_p1 = scmp.lt.u32.totalorder %s306_s16, %s484_s1 }
   0x6   :  { %p312_p2 = pnand %p310_p1, %p307_p0 }
   0x8   :  { %315 = shalt.err (!%p312_p2)
}
   0x9   :  { %s316_s21 = scalar_lea.vmem %s27_s13, 512  ;;  %p321_p4 = scmp.lt.s32.totalorder %s27_s13, %s27_s13 }
   0xa   :  { %p317_p3 = scmp.ne.s32.totalorder %s27_s13, %s316_s21  ;;  %p322_p5 = scmp.lt.s32.totalorder %s316_s21, %s316_s21 }
   0xc   :  { %p323_p6 = por %p322_p5, %p321_p4 }
   0xe   :  { %p324_p7 = pnand %p323_p6, %p317_p3 }
  0x10   :  { %327 = shalt.err (!%p324_p7)
}
  0x11   :  { %s401_s22 = smov 128   ;;  %s402_s23 = smov 8  }
  0x12   :  { %32 = dma.hbm_to_vmem [thread:$0]  %s484_s1, 512, %s27_s13, [#allocation6], %s401_s22, %s401_s22, %s402_s23  }
  0x13   :  { %s403_s26 = smov [#allocation2]   ;;  %s404_s28 = smov [#allocation7]  }
  0x14   :  { %s17_s27 = sshll.u32 %s403_s26, 4  ;;  %s38_s29 = sshll.u32 %s404_s28, 4  ;;  %s18_s27 = int_to_ptr.vmem [resolvable:$true] %s17_s27  ;;  %s39_s29 = int_to_ptr.vmem [resolvable:$true] %s38_s29 }
  0x15   :  { %s328_s5 = scalar_lea.hbm %s483_s0, 128 }
  0x16   :  { %p329_p8 = scmp.ne.s32.totalorder %s483_s0, %s328_s5  ;;  %p332_p9 = scmp.lt.u32.totalorder %s328_s5, %s483_s0 }
  0x18   :  { %p334_p10 = pnand %p332_p9, %p329_p8 }
  0x1a   :  { %337 = shalt.err (!%p334_p10)
}
  0x1b   :  { %s338_s1 = scalar_lea.vmem %s18_s27, 128  ;;  %p343_p12 = scmp.lt.s32.totalorder %s18_s27, %s18_s27 }
  0x1c   :  { %p339_p11 = scmp.ne.s32.totalorder %s18_s27, %s338_s1  ;;  %p344_p13 = scmp.lt.s32.totalorder %s338_s1, %s338_s1 }
  0x1e   :  { %p345_p0 = por %p344_p13, %p343_p12 }
  0x20   :  { %p346_p1 = pnand %p345_p0, %p339_p11 }
  0x22   :  { %349 = shalt.err (!%p346_p1)
}
  0x23   :  { %20 = dma.hbm_to_vmem [thread:$0]  %s483_s0, 128, %s18_s27, [#allocation3]  }
  0x24   :  { %s350_s14 = scalar_lea.hbm %s485_s2, 1024 }
  0x25   :  { %p351_p2 = scmp.ne.s32.totalorder %s485_s2, %s350_s14  ;;  %p354_p3 = scmp.lt.u32.totalorder %s350_s14, %s485_s2 }
  0x27   :  { %p356_p4 = pnand %p354_p3, %p351_p2 }
  0x29   :  { %359 = shalt.err (!%p356_p4)
}
  0x2a   :  { %s360_s19 = scalar_lea.vmem %s39_s29, 1024  ;;  %p365_p6 = scmp.lt.s32.totalorder %s39_s29, %s39_s29 }
  0x2b   :  { %p361_p5 = scmp.ne.s32.totalorder %s39_s29, %s360_s19  ;;  %p366_p7 = scmp.lt.s32.totalorder %s360_s19, %s360_s19 }
  0x2d   :  { %p367_p8 = por %p366_p7, %p365_p6 }
  0x2f   :  { %p368_p9 = pnand %p367_p8, %p361_p5 }
  0x31   :  { %371 = shalt.err (!%p368_p9)
}
  0x32   :  { %44 = dma.hbm_to_vmem [thread:$0]  %s485_s2, 1024, %s39_s29, [#allocation6], %s401_s22, %s401_s22, %s402_s23  }
  0x33   :  { %394 = dma.done.wait [#allocation3], 128  }
  0x34   :  { %395 = vsyncadd [#allocation3], 4294967168 }
  0x35   :  { %396 = dma.done.wait [#allocation6], 1536  }
  0x36   :  { %397 = vsyncadd [#allocation6], 4294965760  ;;  %v405_v0 = vmov 0.0|0.0   ;;  %vm406_vm0 = vmmov 0   ;;  %v407_v1 = vmov 0.0   ;;  %v55_v2 = vld [vmem:[#allocation5] sm:$0xff] }
  0x37   :  { %279 = vmatprep.subr.bf16.mxu0 %v405_v0  ;;  %257 = vmatprep.mubr.msk.f32.mxu0 %vm406_vm0, %v407_v1  ;;  %v56_v3 = vld [vmem:[#allocation5 + $0x8] sm:$0xff]  ;;  %v57_v4 = vld [vmem:[#allocation5 + $0x10] sm:$0xff]  ;;  %v58_v6 = vld [vmem:[#allocation5 + $0x18] sm:$0xff]  ;;  %vm59_vm1 = vcmask 261120   ;;  %vm142_vm2 = vcmask 523264   ;;  %s408_s2 = smov [#allocation8]  }
  0x38   :  { %285 = vmatprep.subr.bf16.mxu1 %v405_v0  ;;  %276 = vmatprep.mubr.msk.f32.mxu1 %vm406_vm0, %v407_v1  ;;  %v280_v5 = vpack.c.bf16 %v56_v3, %v55_v2  ;;  %v134_v7 = vld [vmem:[#allocation7] sm:$0xff]  ;;  %v135_v8 = vld [vmem:[#allocation7 + $0x8] sm:$0xff]  ;;  %v136_v9 = vld [vmem:[#allocation7 + $0x10] sm:$0xff]  ;;  %v283_v11 = vpack.c.bf16 %v58_v6, %v57_v4  ;;  %s223_s21 = sshll.u32 %s408_s2, 4  ;;  %s224_s21 = int_to_ptr.vmem [resolvable:$true] %s223_s21 }
  0x39   :  { %v137_v10 = vld [vmem:[#allocation7 + $0x18] sm:$0xff]  ;;  %v286_v12 = vpack.c.bf16 %v135_v8, %v134_v7  ;;  %v138_v14 = vld [vmem:[#allocation7 + $0x20] sm:$0xff]  ;;  %v139_v15 = vld [vmem:[#allocation7 + $0x28] sm:$0xff]  ;;  %s372_s22 = scalar_lea.vmem %s224_s21, 128  ;;  %p377_p11 = scmp.lt.s32.totalorder %s224_s21, %s224_s21 }
  0x3a   :  { %281 = vmatpush3.bf16.msra.mxu0 %v280_v5  ;;  %v289_v13 = vpack.c.bf16 %v137_v10, %v136_v9  ;;  %v54_v16 = vld [vmem:[#allocation2] sm:$0xff]  ;;  %v292_v17 = vpack.c.bf16 %v139_v15, %v138_v14  ;;  %v140_v18 = vld [vmem:[#allocation7 + $0x30] sm:$0xff]  ;;  %p373_p10 = scmp.ne.s32.totalorder %s224_s21, %s372_s22  ;;  %p378_p12 = scmp.lt.s32.totalorder %s372_s22, %s372_s22 }
  0x3b   :  { %282 = vmatprep.subr.bf16.mxu0 %v405_v0  ;;  %287 = vmatpush3.bf16.msra.mxu1 %v286_v12  ;;  %v141_v19 = vld [vmem:[#allocation7 + $0x38] sm:$0xff] }
  0x3c   :  { %288 = vmatprep.subr.bf16.mxu1 %v405_v0  ;;  %v295_v20 = vpack.c.bf16 %v141_v19, %v140_v18  ;;  %p379_p13 = por %p378_p12, %p377_p11 }
  0x3e   :  { %284 = vmatpush3.bf16.msra.mxu0 %v283_v11  ;;  %p380_p0 = pnand %p379_p13, %p373_p10 }
  0x3f   :  { %290 = vmatpush3.bf16.msra.mxu1 %v289_v13 }
  0x40   :  { %291 = vmatprep.subr.bf16.mxu1 %v405_v0 }
  0x41   :  { %258 = vmatmul.mubr.msk.f32.vlgmr.msra.gmra.mrb[0].mxu0 %vm59_vm1, %v54_v16 }
  0x43   :  { %293 = vmatpush3.bf16.msra.mxu1 %v292_v17 }
  0x44   :  { %294 = vmatprep.subr.bf16.mxu1 %v405_v0 }
  0x47   :  { %296 = vmatpush3.bf16.msra.mxu1 %v295_v20 }
 0x114   :  { %v129_v21 = vpop.f32.mrb[0].mxu0 }
 0x115   :  { %v133_v22 = vmax.f32 %v129_v21, 0.0  ;;  %v259_v23 = vpop.f32.mrb[1].mxu0 }
 0x117   :  { %277 = vmatmul.mubr.msk.f32.vlgmr.msra.gmra.mrb[0].mxu1 %vm142_vm2, %v133_v22 }
 0x1ea   :  { %v212_v24 = vpop.f32.mrb[0].mxu1 }
 0x1eb   :  { %216 = vst [vmem:[#allocation8] sm:$0xff] %v212_v24  ;;  %v278_v25 = vpop.f32.mrb[1].mxu1 }
 0x1ec   :  { %383 = shalt.err (!%p380_p0)
}
 0x1ed   :  { %s384_s25 = scalar_lea.hbm %s486_s3, 128 }
 0x1ee   :  { %p385_p1 = scmp.ne.s32.totalorder %s486_s3, %s384_s25  ;;  %p388_p2 = scmp.lt.u32.totalorder %s384_s25, %s486_s3 }
 0x1f0   :  { %p390_p3 = pnand %p388_p2, %p385_p1 }
 0x1f2   :  { %393 = shalt.err (!%p390_p3)
}
 0x1f3   :  { %226 = dma.vmem_to_hbm [thread:$0]  %s224_s21, 128, %s486_s3, [#allocation4]  }
 0x1f4   :  { %398 = dma.done.wait [#allocation4], 128  }
 0x1f5   :  { %399 = vsyncadd [#allocation4], 4294967168 }
 0x1f6   :  { %230 = vsyncpa [#allocation3], 1 }
 0x1f7   :  { %231 = vsyncpa [#allocation6], 1 }
 0x1f8   :  { %232 = vsyncpa [#allocation4], 1 }

</bundles_post_ra>
